<compile_context>
chip_gen: v6e
topology: v6e:2x2x1
jax: 0.10.0
libtpu: 0.0.40
codegen_flags: <defaults>
</compile_context>

<pallas_src>
import jax
import jax.numpy as jnp
from jax import lax
from jax.experimental import pallas as pl
from jax.experimental.pallas import tpu as pltpu


_TARGET_TILE_ELEMS = 1 << 19       # ~2 MiB of f32 per input tile


def _round_up(x, m):
    return ((x + m - 1) // m) * m


def _largest_divisor(n, align, cap):
    """Largest multiple of `align` that divides n and is <= cap (n % align == 0)."""
    best = align
    d = align
    stop = min(n, cap)
    while d <= stop:
        if n % d == 0:
            best = d
        d += align
    return best


def _pick_blocks(nc, hw):
    ncp = _round_up(nc, 8)           # sublane-pad the image axis
    hwp = _round_up(hw, 128)         # lane-pad the pixel axis
    br = _largest_divisor(ncp, 8, 256)
    bc_cap = max(128, (_TARGET_TILE_ELEMS // br) // 128 * 128)
    bc = _largest_divisor(hwp, 128, bc_cap)
    return br, bc, ncp, hwp


def _vmem_budget(br, bc):
    tile = br * bc * 4
    need = 2 * 2 * tile              # pred + target tiles, double-buffered
    need += 2 * 8 * 128 * 4          # output tile, double-buffered
    need += 2 * br * 128 * 4         # row-sum scratches (lane-padded)
    return int(min(max(need + (2 << 20), 4 << 20), 40 << 20))


def _sign_sum_kernel(p_ref, t_ref, o_ref, psum_ref, tsum_ref):
    """One grid step: (BR, BC) pred/target tiles -> per-image partial row sums.

    On the last column step the per-image signs are subtotalled and written as a
    lane-dense (8, 128) tile: sublane 0 = pred sign subtotal, sublane 1 = target.
    """
    j = pl.program_id(1)
    ncols = pl.num_programs(1)

    @pl.when(j == 0)
    def _init():
        psum_ref[...] = jnp.zeros_like(psum_ref)
        tsum_ref[...] = jnp.zeros_like(tsum_ref)

    psum_ref[...] += jnp.sum(p_ref[...], axis=-1, keepdims=True)
    tsum_ref[...] += jnp.sum(t_ref[...], axis=-1, keepdims=True)

    @pl.when(j == ncols - 1)
    def _finalize():
        # sign(s) with sign(0) = +1  (torch.angle(0) == 0  ->  exp(1j*0) == 1).
        sp = jnp.sum(jnp.where(psum_ref[...] >= 0.0, 1.0, -1.0))
        st = jnp.sum(jnp.where(tsum_ref[...] >= 0.0, 1.0, -1.0))
        sub = lax.broadcasted_iota(jnp.int32, o_ref.shape, 0)
        o_ref[...] = jnp.where(sub == 0, sp, jnp.where(sub == 1, st, 0.0))


def stn_phase_only_loss(pred, target, loss_weight=1.0):
    """STNPhaseOnlyLoss.forward for (N, C, H, W) pred/target."""
    N, C, H, W = pred.shape
    if W < 2:
        raise NotImplementedError("stn_phase_only_loss requires W >= 2")
    w_out = 2 * (W // 2)             # torch.fft.irfft2 default output width
    NC = N * C
    HW = H * W

    p = pred.astype(jnp.float32).reshape(NC, HW)
    t = target.astype(jnp.float32).reshape(NC, HW)

    BR, BC, NCp, HWp = _pick_blocks(NC, HW)
    row_pad = NCp - NC
    col_pad = HWp - HW
    if row_pad or col_pad:
        # Zero pixels never change a per-image sum; padded all-zero images
        # contribute exactly +1 to both subtotals (subtracted back out below).
        p = jnp.pad(p, ((0, row_pad), (0, col_pad)))
        t = jnp.pad(t, ((0, row_pad), (0, col_pad)))

    nrb = NCp // BR
    ncb = HWp // BC

    partials = pl.pallas_call(
        _sign_sum_kernel,
        out_shape=jax.ShapeDtypeStruct((nrb * 8, 128), jnp.float32),
        grid_spec=pltpu.PrefetchScalarGridSpec(
            num_scalar_prefetch=0,
            grid=(nrb, ncb),
            in_specs=[
                pl.BlockSpec((BR, BC), lambda i, j: (i, j)),   # pred tiles
                pl.BlockSpec((BR, BC), lambda i, j: (i, j)),   # target tiles
            ],
            out_specs=pl.BlockSpec((8, 128), lambda i, j: (i, 0)),
            scratch_shapes=[pltpu.VMEM((BR, 1), jnp.float32),
                            pltpu.VMEM((BR, 1), jnp.float32)],
        ),
        compiler_params=pltpu.CompilerParams(
            dimension_semantics=("parallel", "arbitrary"),
            vmem_limit_bytes=_vmem_budget(BR, BC)),
    )(p, t)

    # Sublane 0 of each row-block tile = pred sign subtotal, sublane 1 = target.
    sign_p = jnp.sum(partials[0::8, 0]) - row_pad
    sign_t = jnp.sum(partials[1::8, 0]) - row_pad

    denom = NC * H * w_out
    return loss_weight * jnp.abs(sign_t - sign_p) / denom * 0.01


def _reference_loss(pred, target, loss_weight=1.0):
    """Pure-JAX reference matching the PyTorch forward."""
    pf = jnp.fft.rfft2(pred)
    tf_ = jnp.fft.rfft2(target)
    pm = jnp.mean(jnp.fft.irfft2(jnp.exp(1j * jnp.angle(pf))))
    tm = jnp.mean(jnp.fft.irfft2(jnp.exp(1j * jnp.angle(tf_))))
    return loss_weight * jnp.abs(tm - pm) * 0.01


if __name__ == "__main__":
    key = jax.random.PRNGKey(0)
    k1, k2 = jax.random.split(key)

    N, C, H, W = 2, 4, 16, 16
    # Small offsets make the per-image DC signs (the analytically relevant part of
    # this loss) differ between pred and target, so the loss is well away from zero.
    pred = jax.random.normal(k1, (N, C, H, W), dtype=jnp.float32) - 0.5
    target = jax.random.normal(k2, (N, C, H, W), dtype=jnp.float32) + 0.5

    loss_fn = jax.jit(stn_phase_only_loss)
    loss = jax.block_until_ready(loss_fn(pred, target))

    ref = jax.block_until_ready(_reference_loss(pred, target, 1.0))

    assert jnp.isfinite(loss), "loss is not finite"
    assert jnp.allclose(loss, ref, rtol=1e-3, atol=1e-6), (loss, ref)

    print("KERNEL_OK")
</pallas_src>

<mosaic_0001>
module attributes {stable_mosaic.version = 11 : i64} {
  func.func @_sign_sum_kernel(%arg0: i32, %arg1: i32, %arg2: memref<8x256xf32, #tpu.memory_space<vmem>>, %arg3: memref<8x256xf32, #tpu.memory_space<vmem>>, %arg4: memref<8x128xf32, #tpu.memory_space<vmem>>, %arg5: memref<8x1xf32, #tpu.memory_space<vmem>>, %arg6: memref<8x1xf32, #tpu.memory_space<vmem>>) attributes {dimension_semantics = [#tpu.dimension_semantics<parallel>, #tpu.dimension_semantics<arbitrary>], iteration_bounds = array<i64: 1, 1>, scalar_prefetch = 0 : i64, scratch_operands = 2 : i64, tpu.core_type = #tpu.core_type<tc>, window_params = [{transform_indices = @transform_0, window_bounds = array<i64: 8, 256>}, {transform_indices = @transform_1, window_bounds = array<i64: 8, 256>}, {transform_indices = @transform_2, window_bounds = array<i64: 8, 128>}]} {
    %c0_i32 = arith.constant 0 : i32
    %0 = arith.cmpi eq, %arg1, %c0_i32 : i32
    %1 = arith.extui %0 : i1 to i32
    %c0_i32_0 = arith.constant 0 : i32
    %2 = arith.cmpi ne, %1, %c0_i32_0 : i32
    scf.if %2 {
      %cst_15 = arith.constant 0.000000e+00 : f32
      %18 = vector.broadcast %cst_15 : f32 to vector<8x1xf32>
      %c0_16 = arith.constant 0 : index
      %c0_17 = arith.constant 0 : index
      %19 = vector.load %arg5[%c0_16, %c0_17] : memref<8x1xf32, #tpu.memory_space<vmem>>, vector<8x1xf32>
      tpu.vector_store %arg5[%c0_16, %c0_17], %18 {strides = array<i32>} : memref<8x1xf32, #tpu.memory_space<vmem>>, vector<8x1xf32>,
      %cst_18 = arith.constant 0.000000e+00 : f32
      %20 = vector.broadcast %cst_18 : f32 to vector<8x1xf32>
      %c0_19 = arith.constant 0 : index
      %c0_20 = arith.constant 0 : index
      %21 = vector.load %arg6[%c0_19, %c0_20] : memref<8x1xf32, #tpu.memory_space<vmem>>, vector<8x1xf32>
      tpu.vector_store %arg6[%c0_19, %c0_20], %20 {strides = array<i32>} : memref<8x1xf32, #tpu.memory_space<vmem>>, vector<8x1xf32>,
    } else {
    }
    %c0 = arith.constant 0 : index
    %c0_1 = arith.constant 0 : index
    %3 = vector.load %arg5[%c0, %c0_1] : memref<8x1xf32, #tpu.memory_space<vmem>>, vector<8x1xf32>
    %c0_2 = arith.constant 0 : index
    %c0_3 = arith.constant 0 : index
    %4 = vector.load %arg2[%c0_2, %c0_3] : memref<8x256xf32, #tpu.memory_space<vmem>>, vector<8x256xf32>
    %cst = arith.constant dense<0.000000e+00> : vector<8xf32>
    %5 = vector.multi_reduction <add>, %4, %cst [1] : vector<8x256xf32> to vector<8xf32>
    %6 = vector.shape_cast %5 : vector<8xf32> to vector<8x1xf32>
    %7 = arith.addf %3, %6 : vector<8x1xf32>
    %c0_4 = arith.constant 0 : index
    %c0_5 = arith.constant 0 : index
    %8 = vector.load %arg5[%c0_4, %c0_5] : memref<8x1xf32, #tpu.memory_space<vmem>>, vector<8x1xf32>
    tpu.vector_store %arg5[%c0_4, %c0_5], %7 {strides = array<i32>} : memref<8x1xf32, #tpu.memory_space<vmem>>, vector<8x1xf32>,
    %c0_6 = arith.constant 0 : index
    %c0_7 = arith.constant 0 : index
    %9 = vector.load %arg6[%c0_6, %c0_7] : memref<8x1xf32, #tpu.memory_space<vmem>>, vector<8x1xf32>
    %c0_8 = arith.constant 0 : index
    %c0_9 = arith.constant 0 : index
    %10 = vector.load %arg3[%c0_8, %c0_9] : memref<8x256xf32, #tpu.memory_space<vmem>>, vector<8x256xf32>
    %cst_10 = arith.constant dense<0.000000e+00> : vector<8xf32>
    %11 = vector.multi_reduction <add>, %10, %cst_10 [1] : vector<8x256xf32> to vector<8xf32>
    %12 = vector.shape_cast %11 : vector<8xf32> to vector<8x1xf32>
    %13 = arith.addf %9, %12 : vector<8x1xf32>
    %c0_11 = arith.constant 0 : index
    %c0_12 = arith.constant 0 : index
    %14 = vector.load %arg6[%c0_11, %c0_12] : memref<8x1xf32, #tpu.memory_space<vmem>>, vector<8x1xf32>
    tpu.vector_store %arg6[%c0_11, %c0_12], %13 {strides = array<i32>} : memref<8x1xf32, #tpu.memory_space<vmem>>, vector<8x1xf32>,
    %c0_i32_13 = arith.constant 0 : i32
    %15 = arith.cmpi eq, %arg1, %c0_i32_13 : i32
    %16 = arith.extui %15 : i1 to i32
    %c0_i32_14 = arith.constant 0 : i32
    %17 = arith.cmpi ne, %16, %c0_i32_14 : i32
    scf.if %17 {
      %c0_15 = arith.constant 0 : index
      %c0_16 = arith.constant 0 : index
      %18 = vector.load %arg5[%c0_15, %c0_16] : memref<8x1xf32, #tpu.memory_space<vmem>>, vector<8x1xf32>
      %cst_17 = arith.constant 0.000000e+00 : f32
      %19 = vector.broadcast %cst_17 : f32 to vector<8x1xf32>
      %20 = arith.cmpf oge, %18, %19 : vector<8x1xf32>
      %cst_18 = arith.constant 1.000000e+00 : f32
      %cst_19 = arith.constant -1.000000e+00 : f32
      %21 = vector.broadcast %cst_18 : f32 to vector<8x1xf32>
      %22 = vector.broadcast %cst_19 : f32 to vector<8x1xf32>
      %23 = arith.select %20, %21, %22 : vector<8x1xi1>, vector<8x1xf32>
      %24 = vector.shape_cast %23 : vector<8x1xf32> to vector<1x8x1xf32>
      %cst_20 = arith.constant dense<0.000000e+00> : vector<1xf32>
      %25 = vector.multi_reduction <add>, %24, %cst_20 [1, 2] : vector<1x8x1xf32> to vector<1xf32>
      %26 = vector.shape_cast %25 : vector<1xf32> to vector<1x1x1xf32>
      %27 = vector.extract %26[0, 0, 0] : f32 from vector<1x1x1xf32>
      %c0_21 = arith.constant 0 : index
      %c0_22 = arith.constant 0 : index
      %28 = vector.load %arg6[%c0_21, %c0_22] : memref<8x1xf32, #tpu.memory_space<vmem>>, vector<8x1xf32>
      %cst_23 = arith.constant 0.000000e+00 : f32
      %29 = vector.broadcast %cst_23 : f32 to vector<8x1xf32>
      %30 = arith.cmpf oge, %28, %29 : vector<8x1xf32>
      %cst_24 = arith.constant 1.000000e+00 : f32
      %cst_25 = arith.constant -1.000000e+00 : f32
      %31 = vector.broadcast %cst_24 : f32 to vector<8x1xf32>
      %32 = vector.broadcast %cst_25 : f32 to vector<8x1xf32>
      %33 = arith.select %30, %31, %32 : vector<8x1xi1>, vector<8x1xf32>
      %34 = vector.shape_cast %33 : vector<8x1xf32> to vector<1x8x1xf32>
      %cst_26 = arith.constant dense<0.000000e+00> : vector<1xf32>
      %35 = vector.multi_reduction <add>, %34, %cst_26 [1, 2] : vector<1x8x1xf32> to vector<1xf32>
      %36 = vector.shape_cast %35 : vector<1xf32> to vector<1x1x1xf32>
      %37 = vector.extract %36[0, 0, 0] : f32 from vector<1x1x1xf32>
      %38 = tpu.iota {dimensions = array<i32: 0>} : vector<8x128xi32>
      %c0_i32_27 = arith.constant 0 : i32
      %39 = vector.broadcast %c0_i32_27 : i32 to vector<8x128xi32>
      %40 = arith.cmpi eq, %38, %39 : vector<8x128xi32>
      %c1_i32 = arith.constant 1 : i32
      %41 = vector.broadcast %c1_i32 : i32 to vector<8x128xi32>
      %42 = arith.cmpi eq, %38, %41 : vector<8x128xi32>
      %cst_28 = arith.constant 0.000000e+00 : f32
      %43 = vector.broadcast %37 : f32 to vector<8x128xf32>
      %44 = vector.broadcast %cst_28 : f32 to vector<8x128xf32>
      %45 = arith.select %42, %43, %44 : vector<8x128xi1>, vector<8x128xf32>
      %46 = vector.broadcast %27 : f32 to vector<8x128xf32>
      %47 = arith.select %40, %46, %45 : vector<8x128xi1>, vector<8x128xf32>
      %c0_29 = arith.constant 0 : index
      %c0_30 = arith.constant 0 : index
      %48 = vector.load %arg4[%c0_29, %c0_30] : memref<8x128xf32, #tpu.memory_space<vmem>>, vector<8x128xf32>
      tpu.vector_store %arg4[%c0_29, %c0_30], %47 {strides = array<i32>} : memref<8x128xf32, #tpu.memory_space<vmem>>, vector<8x128xf32>,
    } else {
    }
    return
  }
  func.func @transform_0(%arg0: i32, %arg1: i32) -> (i32, i32) {
    %c0_i32 = arith.constant 0 : i32
    return %arg0, %arg1 : i32, i32
  }
  func.func @transform_1(%arg0: i32, %arg1: i32) -> (i32, i32) {
    %c0_i32 = arith.constant 0 : i32
    return %arg0, %arg1 : i32, i32
  }
  func.func @transform_2(%arg0: i32, %arg1: i32) -> (i32, i32) {
    %c0_i32 = arith.constant 0 : i32
    %c0_i32_0 = arith.constant 0 : i32
    return %arg0, %c0_i32 : i32, i32
  }
}

</mosaic_0001>

<bundles_post_ra>
// kernel: stn_phase_only_loss.1
= control target key start
LH: loop header
LB: loop body
LE: loop exit
PB: predicated region body
PF: predicated region fallthrough
CT: control target
= control target key end

     0   :  { %vm15_vm0 = vcmask 7168   ;;  %v83_v3 = vmov 0.0   ;;  %v84_v14 = vmov -1.0   ;;  %v64_v34 = vlaneseq  ;;  %s121_s0 = inlined_call_operand.vmem [shape: f32[8,256], index: 0, kind: input, shape index: {}]   ;;  %s122_s1 = inlined_call_operand.vmem [shape: f32[8,256], index: 1, kind: input, shape index: {}]   ;;  %s123_s2 = inlined_call_operand.vmem [shape: f32[8,128], index: 2, kind: output, shape index: {}]  }
   0x1   :  { %v19_v0 = vld [vmem:[%s121_s0] sm:$0xff]  ;;  %v20_v1 = vld [vmem:[%s121_s0 + $0x8] sm:$0xff]  ;;  %16 = vst.msk [vmem:[#allocation2] sm:$0xff] %vm15_vm0, %v83_v3  ;;  %17 = vst.msk [vmem:[#allocation3] sm:$0xff] %vm15_vm0, %v83_v3 }
   0x2   :  { %v28_v2 = vld [vmem:[%s122_s1] sm:$0xff]  ;;  %v21_v4 = vadd.f32 %v20_v1, %v19_v0  ;;  %v29_v5 = vld [vmem:[%s122_s1 + $0x8] sm:$0xff]  ;;  %v65_v35 = vshrl.u32 %v64_v34, 7 }
   0x3   :  { %v30_v6 = vadd.f32 %v29_v5, %v28_v2 }
   0x4   :  { %22 = vadd.xlane.f32.xlu0 %v21_v4  ;;  %vm67_vm3 = vcmp.eq.s32.totalorder %v65_v35, 1  ;;  %vm66_vm4 = vcmp.eq.s32.totalorder %v65_v35, 0 }
   0x8   :  { %31 = vadd.xlane.f32.xlu0 %v30_v6  ;;  %v18_v7 = vld [vmem:[#allocation2] sm:$0xff]  ;;  %v27_v10 = vld [vmem:[#allocation3] sm:$0xff] }
  0x8d   :  { %v23_v8 = vpop.xlane.xlu0 %22 }
  0x8e   :  { %v24_v9 = vadd.f32 %v23_v8, %v18_v7 }
  0x90   :  { %26 = vst.msk [vmem:[#allocation2] sm:$0xff] %vm15_vm0, %v24_v9 }
  0x91   :  { %v32_v11 = vpop.xlane.xlu0 %31 }
  0x92   :  { %v33_v12 = vadd.f32 %v32_v11, %v27_v10 }
  0x94   :  { %34 = vst.msk [vmem:[#allocation3] sm:$0xff] %vm15_vm0, %v33_v12 }
  0x97   :  { %v38_v13 = vld [vmem:[#allocation2] sm:$0xff] }
  0x98   :  { %vm39_vm1 = vcmp.ge.f32.partialorder %v38_v13, 0.0 }
  0x99   :  { %v40_v15 = vsel %vm39_vm1, 1.0, %v84_v14 }
  0x9a   :  { %v41_v16 = vsel %vm15_vm0, %v40_v15, 0.0 }
  0x9b   :  { %42 = vadd.xlane.f32.xlu1 %v41_v16  ;;  %v51_v17 = vld [vmem:[#allocation3] sm:$0xff] }
  0x9c   :  { %vm52_vm2 = vcmp.ge.f32.partialorder %v51_v17, 0.0 }
  0x9d   :  { %v53_v18 = vsel %vm52_vm2, 1.0, %v84_v14 }
  0x9e   :  { %v54_v19 = vsel %vm15_vm0, %v53_v18, 0.0 }
  0x9f   :  { %55 = vadd.xlane.f32.xlu1 %v54_v19 }
 0x124   :  { %v43_v20 = vpop.xlane.xlu1 %42 }
 0x125   :  { %v44_v21 = vrot.slane %v43_v20, 4 }
 0x127   :  { %v45_v22 = vadd.f32 %v44_v21, %v43_v20 }
 0x128   :  { %v56_v23 = vpop.xlane.xlu1 %55 }
 0x129   :  { %v46_v24 = vrot.slane %v45_v22, 2  ;;  %v57_v25 = vrot.slane %v56_v23, 4 }
 0x12b   :  { %v58_v26 = vadd.f32 %v57_v25, %v56_v23  ;;  %v47_v27 = vadd.f32 %v46_v24, %v45_v22 }
 0x12d   :  { %v59_v28 = vrot.slane %v58_v26, 2  ;;  %v48_v29 = vrot.slane %v47_v27, 1 }
 0x12f   :  { %v60_v30 = vadd.f32 %v59_v28, %v58_v26  ;;  %v49_v31 = vadd.f32 %v48_v29, %v47_v27 }
 0x131   :  { %77 = vpush %v49_v31  ;;  %v61_v32 = vrot.slane %v60_v30, 1 }
 0x133   :  { %v62_v33 = vadd.f32 %v61_v32, %v60_v30 }
 0x135   :  { %79 = vpush %v62_v33 }
 0x162   :  { %s78_s0 = spop %77 }
 0x163   :  { %v70_v37 = vstv %s78_s0 }
 0x166   :  { %s80_s1 = spop %79 }
 0x167   :  { %v68_v36 = vstv %s80_s1 }
 0x168   :  { %v69_v38 = vsel %vm67_vm3, %v68_v36, 0.0 }
 0x169   :  { %v71_v39 = vsel %vm66_vm4, %v70_v37, %v69_v38 }
 0x16a   :  { %72 = vst [vmem:[%s123_s2] sm:$0xff] %v71_v39 }

</bundles_post_ra>
